<compile_context>
chip_gen: v7x
topology: tpu7x:2x2x1
jax: 0.10.0
libtpu: 0.0.40
codegen_flags: <defaults>
</compile_context>

<pallas_src>
import math
import functools

import jax
import jax.numpy as jnp
from jax.experimental import pallas as pl
from jax.experimental.pallas import tpu as pltpu


# -----------------------------------------------------------------------------
# PE buffer construction (plain-JAX glue; matches the PyTorch register_buffer)
# -----------------------------------------------------------------------------
def make_positional_encoding_buffer(d_model: int, max_len: int,
                                    dtype=jnp.float32) -> jnp.ndarray:
    """Builds the (max_len, 1, d_model) sinusoidal PE buffer."""
    assert d_model % 2 == 0, "d_model must be even (same constraint as PyTorch)"
    position = jnp.arange(max_len, dtype=jnp.float32)[:, None]            # (L, 1)
    div_term = jnp.exp(
        jnp.arange(0, d_model, 2, dtype=jnp.float32) * (-math.log(10000.0) / d_model)
    )                                                                      # (D/2,)
    ang = position * div_term                                              # (L, D/2)
    # interleave: pe[:, 0::2] = sin, pe[:, 1::2] = cos
    pe = jnp.stack([jnp.sin(ang), jnp.cos(ang)], axis=-1).reshape(max_len, d_model)
    return pe.astype(dtype)[:, None, :]                                    # (L, 1, D)


# -----------------------------------------------------------------------------
# Kernel
# -----------------------------------------------------------------------------
def _pe_add_kernel(scale_ref, x_ref, pe_ref, o_ref, *, batch: int):
    """One grid step over a tile of sequence rows.

    scale_ref : (1,) f32 scalar in SMEM
    x_ref/o_ref : (TS, batch * d_model)  lane-dense collapsed (seq, batch*d) view
    pe_ref      : (TS, d_model) in the stored pe dtype (f32 or bf16)
    """
    pe_scaled = scale_ref[0] * pe_ref[...].astype(jnp.float32)        # (TS, D), once/tile
    if batch > 1:
        # Broadcast to the full collapsed width -> one unmasked lane-dense store
        # instead of `batch` narrow column-sliced (masked) stores.
        pe_scaled = jnp.tile(pe_scaled, (1, batch))                   # (TS, B*D)
    o_ref[...] = (x_ref[...].astype(jnp.float32) + pe_scaled).astype(o_ref.dtype)


# -----------------------------------------------------------------------------
# Tiling / VMEM policy
# -----------------------------------------------------------------------------
@functools.lru_cache(maxsize=1)
def _vmem_limit_bytes() -> int:
    """Generation-aware scoped-VMEM limit: ~64 MiB on v5e/v6e, 32 MiB on v7x."""
    try:
        info_fn = getattr(pltpu, "get_tpu_info", None)
        if info_fn is not None:
            cap = int(info_fn().vmem_capacity_bytes)
            return int(max(32 << 20, min(64 << 20, cap // 2)))
    except Exception:
        pass
    return 32 << 20  # safe default on every generation (v7x default scoped limit)


def _choose_seq_tile(seq_len: int, row_bytes: int, itemsize: int,
                     vmem_limit_bytes: int,
                     target_block_bytes: int = 2 << 20) -> int:
    """Sequence rows per block: ~2 MiB x-blocks, dtype-aligned, VMEM-budgeted."""
    # dtype-aware sublane packing: 8 rows f32, 16 bf16, 32 int8
    align = max(8, 32 // max(itemsize, 1))
    if seq_len <= align:
        return seq_len
    # Budget: the x block appears ~4x (double-buffered input + output) plus
    # ~3 f32-block-sized compute temporaries in the kernel; keep the sum well
    # inside vmem_limit_bytes.  (For extremely wide rows where even one
    # `align`-row block blows the budget, a second grid dim over the collapsed
    # B*D axis would be needed; not required for typical d_model/batch sizes.)
    denom = 4 + 3 * max(1, 4 // max(itemsize, 1))
    budget = max(row_bytes * align, vmem_limit_bytes // denom)
    ts = max(1, min(target_block_bytes, budget) // max(row_bytes, 1))
    ts = min(ts, seq_len)
    # Guarantee >= 2 grid blocks when the shape allows it, so v7x megacore can
    # shard the (purely HBM-bound) stream across both TensorCores.
    half_aligned = (((seq_len + 1) // 2) // align) * align
    if half_aligned >= align:
        ts = min(ts, half_aligned)
    ts = max(align, (ts // align) * align)
    return min(ts, seq_len)


# -----------------------------------------------------------------------------
# Forward
# -----------------------------------------------------------------------------
@jax.jit
def positional_encoding_forward(x, pe, scale):
    """x: (S, B, D); pe: (max_len, 1, D) or (max_len, D); scale: (1,) f32."""
    S, B, D = x.shape
    # Free contiguous reshapes -> lane-dense 2D views (no HBM copies).
    x2d = x.reshape(S, B * D)
    pe2d = pe.reshape(pe.shape[0], -1)                    # (max_len, D), no cast/copy
    assert pe2d.shape[0] >= S and pe2d.shape[1] == D

    vmem_limit = _vmem_limit_bytes()
    ts = _choose_seq_tile(S, B * D * x.dtype.itemsize, x.dtype.itemsize, vmem_limit)
    grid = (pl.cdiv(S, ts),)

    # Pass pe whole: only the first ceil(S/ts) blocks are ever DMA'd.  The only
    # corner needing a (tiny) slice is a ragged S where ts == S isn't a multiple
    # of 8 and pe is longer than S (the (8, ·) sublane rule on the pe block).
    if ts % 8 == 0 or ts == pe2d.shape[0]:
        pe_arg = pe2d
    else:
        pe_arg = pe2d[:S]

    cost = pl.CostEstimate(
        flops=2 * S * B * D,                                  # mul + add per element
        transcendentals=0,
        bytes_accessed=(
            2 * S * B * D * x.dtype.itemsize                  # x read + out write
            + S * D * pe2d.dtype.itemsize                     # pe read (blocks actually fetched)
            + scale.size * scale.dtype.itemsize
        ),
    )

    # NOTE: no input_output_aliases — x is usually a non-donated jit argument, so
    # aliasing would force XLA to insert a defensive copy (more HBM traffic).
    out2d = pl.pallas_call(
        functools.partial(_pe_add_kernel, batch=B),
        out_shape=jax.ShapeDtypeStruct((S, B * D), x.dtype),
        grid=grid,
        in_specs=[
            pl.BlockSpec(memory_space=pltpu.SMEM),            # scale (scalar param)
            pl.BlockSpec((ts, B * D), lambda i: (i, 0)),      # x, streamed per tile
            pl.BlockSpec((ts, D), lambda i: (i, 0)),          # pe, minimal traffic
        ],
        out_specs=pl.BlockSpec((ts, B * D), lambda i: (i, 0)),
        compiler_params=pltpu.CompilerParams(
            dimension_semantics=("parallel",),                # seq tiles -> v7x megacore
            vmem_limit_bytes=vmem_limit,                      # generation-aware
        ),
        cost_estimate=cost,
    )(scale, x2d, pe_arg)

    return out2d.reshape(S, B, D)


if __name__ == "__main__":
    key = jax.random.PRNGKey(0)
    k1, k2 = jax.random.split(key)

    # Small shapes matching the module's (seq, batch, d_model) convention.
    S, B, D = 8, 2, 32
    MAX_LEN = 64
    x = jax.random.normal(k1, (S, B, D), dtype=jnp.float32)
    pe = make_positional_encoding_buffer(D, MAX_LEN)                    # f32 buffer
    scale = jnp.ones((1,), dtype=jnp.float32)                           # nn.Parameter(torch.ones(1))

    out = jax.block_until_ready(positional_encoding_forward(x, pe, scale))
    ref = x + scale[0] * pe[:S]
    assert out.shape == (S, B, D) and out.dtype == x.dtype
    assert jnp.allclose(out, ref, atol=1e-6, rtol=1e-6)

    # Larger bf16 run: multi-tile streaming grid (>= 2 blocks for megacore),
    # bf16 pe buffer (halved pe HBM traffic), f32-accumulate / bf16-store path.
    S2, B2, D2 = 8192, 2, 256
    x2 = jax.random.normal(k2, (S2, B2, D2), dtype=jnp.float32).astype(jnp.bfloat16)
    pe2 = make_positional_encoding_buffer(D2, S2, dtype=jnp.bfloat16)
    scale2 = jnp.full((1,), 1.5, dtype=jnp.float32)
    out2 = jax.block_until_ready(positional_encoding_forward(x2, pe2, scale2))
    ref2 = (x2.astype(jnp.float32)
            + scale2[0] * pe2[:S2].astype(jnp.float32)).astype(jnp.bfloat16)
    assert out2.shape == (S2, B2, D2) and out2.dtype == jnp.bfloat16
    assert jnp.allclose(out2.astype(jnp.float32), ref2.astype(jnp.float32),
                        atol=5e-2, rtol=5e-2)

    print("KERNEL_OK")
</pallas_src>

<mosaic_0001>
module attributes {stable_mosaic.version = 11 : i64} {
  func.func @_pe_add_kernel(%arg0: i32, %arg1: memref<1xf32, #tpu.memory_space<smem>>, %arg2: memref<8x64xf32, #tpu.memory_space<vmem>>, %arg3: memref<8x32xf32, #tpu.memory_space<vmem>>, %arg4: memref<8x64xf32, #tpu.memory_space<vmem>>) attributes {dimension_semantics = [#tpu.dimension_semantics<parallel>], iteration_bounds = array<i64: 1>, scalar_prefetch = 0 : i64, scratch_operands = 0 : i64, tpu.core_type = #tpu.core_type<tc>, window_params = [{transform_indices = @transform_0, window_bounds = array<i64: 1>}, {transform_indices = @transform_1, window_bounds = array<i64: 8, 64>}, {transform_indices = @transform_2, window_bounds = array<i64: 8, 32>}, {transform_indices = @transform_3, window_bounds = array<i64: 8, 64>}]} {
    %c0 = arith.constant 0 : index
    %0 = memref.load %arg1[%c0] : memref<1xf32, #tpu.memory_space<smem>>
    %c0_0 = arith.constant 0 : index
    %c0_1 = arith.constant 0 : index
    %1 = vector.load %arg3[%c0_0, %c0_1] : memref<8x32xf32, #tpu.memory_space<vmem>>, vector<8x32xf32>
    %2 = vector.broadcast %0 : f32 to vector<8x32xf32>
    %3 = arith.mulf %2, %1 : vector<8x32xf32>
    %4 = tpu.concatenate %3, %3 in 1 : vector<8x32xf32>, vector<8x32xf32> -> vector<8x64xf32>
    %c0_2 = arith.constant 0 : index
    %c0_3 = arith.constant 0 : index
    %5 = vector.load %arg2[%c0_2, %c0_3] : memref<8x64xf32, #tpu.memory_space<vmem>>, vector<8x64xf32>
    %6 = arith.addf %5, %4 : vector<8x64xf32>
    %c0_4 = arith.constant 0 : index
    %c0_5 = arith.constant 0 : index
    %7 = vector.load %arg4[%c0_4, %c0_5] : memref<8x64xf32, #tpu.memory_space<vmem>>, vector<8x64xf32>
    tpu.vector_store %arg4[%c0_4, %c0_5], %6 {strides = array<i32>} : memref<8x64xf32, #tpu.memory_space<vmem>>, vector<8x64xf32>,
    return
  }
  func.func @transform_0(%arg0: i32) -> i32 {
    %c0_i32 = arith.constant 0 : i32
    %c0_i32_0 = arith.constant 0 : i32
    return %c0_i32 : i32
  }
  func.func @transform_1(%arg0: i32) -> (i32, i32) {
    %c0_i32 = arith.constant 0 : i32
    %c0_i32_0 = arith.constant 0 : i32
    return %arg0, %c0_i32 : i32, i32
  }
  func.func @transform_2(%arg0: i32) -> (i32, i32) {
    %c0_i32 = arith.constant 0 : i32
    %c0_i32_0 = arith.constant 0 : i32
    return %arg0, %c0_i32 : i32, i32
  }
  func.func @transform_3(%arg0: i32) -> (i32, i32) {
    %c0_i32 = arith.constant 0 : i32
    %c0_i32_0 = arith.constant 0 : i32
    return %arg0, %c0_i32 : i32, i32
  }
}

</mosaic_0001>

<bundles_post_ra>
// kernel: positional_encoding_forward.1
= control target key start
LH: loop header
LB: loop body
LE: loop exit
PB: predicated region body
PF: predicated region fallthrough
CT: control target
= control target key end

     0   :  { %s34_s16 = smov 32   ;;  %vm23_vm0 = vcmask 261120   ;;  %vm27_vm1 = vcmask 523264   ;;  %s67_s0 = inlined_call_operand.<no memory space> [shape: f32[1], index: 0, kind: input, shape index: {}]   ;;  %s68_s2 = inlined_call_operand.vmem [shape: f32[64,32], index: 2, kind: input, shape index: {}]   ;;  %s69_s1 = inlined_call_operand.vmem [shape: f32[8,64], index: 1, kind: input, shape index: {}]   ;;  %s70_s3 = inlined_call_operand.vmem [shape: f32[8,64], index: 3, kind: output, shape index: {}]  }
   0x1   :  { %v16_v0 = vld [vmem:[%s68_s2] sm:$0xff]  ;;  %v17_v1 = vstv %s67_s0 }
   0x2   :  { %v18_v2 = vmul.f32 %v17_v1, %v16_v0  ;;  %v25_v3 = vld [vmem:[%s69_s1] sm:$0xff] }
   0x4   :  { %20 = vrot.lane.b32.xlu0 %v18_v2, %s34_s16 }
  0x76   :  { %v21_v4 = vpop.permute.xlu0 %20 }
  0x77   :  { %v24_v5 = vsel %vm23_vm0, %v18_v2, %v21_v4 }
  0x78   :  { %v26_v6 = vadd.f32 %v25_v3, %v24_v5 }
  0x7a   :  { %28 = vst.msk [vmem:[%s70_s3] sm:$0xff] %vm27_vm1, %v26_v6 }

</bundles_post_ra>
